<compile_context>
chip_gen: v5e
topology: v5e:2x2
jax: 0.10.0
libtpu: 0.0.40
codegen_flags: <defaults>
</compile_context>

<pallas_src>
import functools

import jax
import jax.numpy as jnp
from jax.experimental import pallas as pl
from jax.experimental.pallas import tpu as pltpu


def _round_up(n, m):
    return ((n + m - 1) // m) * m


def _normal_dist_kernel(x_ref, w_ref, b_ref, mu_ref, scale_ref, acc_ref,
                        *, d_out_p):
    """Fused two-head matmul with K-axis accumulation and f32 epilogue."""
    k = pl.program_id(1)

    @pl.when(k == 0)
    def _():
        acc_ref[...] = jnp.zeros_like(acc_ref)

    # Single MXU pass over the concatenated heads; accumulate in f32.
    acc_ref[...] += jnp.dot(x_ref[...], w_ref[...],
                            preferred_element_type=jnp.float32)

    @pl.when(k == pl.num_programs(1) - 1)
    def _():
        y = acc_ref[...] + b_ref[...]                 # bias add in f32 (VPU)

        # Mean head: first d_out_p (lane-dense, 128-multiple) columns.
        mu_ref[...] = y[:, :d_out_p].astype(mu_ref.dtype)

        # Log-scale head: centered softplus, numerically stable, all in f32.
        z = y[:, d_out_p:] + 0.5
        sp = jnp.maximum(z, 0.0) + jnp.log1p(jnp.exp(-jnp.abs(z)))   # EUP exp/log
        scale_ref[...] = (sp + 1e-8).astype(scale_ref.dtype)


def normal_distribution_layer(x, w_mu, b_mu, w_ls, b_ls,
                              *, tile_b=512, mxu_dtype=None,
                              weight_vmem_budget=12 * 1024 * 1024):
    """Returns (mu, scale) of the Normal distribution.

    x:    [B, D_in]      float32
    w_*:  [D_in, D_out]  (pre-transposed vs. PyTorch's [out, in])
    b_*:  [D_out]
    mxu_dtype: optionally jnp.bfloat16 to feed the MXU with bf16 operands
               (v6e/v7x); the epilogue stays f32 either way.
    weight_vmem_budget: bytes of VMEM the (per-K-tile) weight block may use;
               controls when the contraction axis gets tiled.
    """
    B, D_in = x.shape
    D_out = w_mu.shape[1]

    # ---- Lane-dense head width: pad each head to a multiple of 128 ---------
    D_out_p = _round_up(D_out, 128)
    pad_n = D_out_p - D_out
    w_mu_p = jnp.pad(w_mu, ((0, 0), (0, pad_n)))
    w_ls_p = jnp.pad(w_ls, ((0, 0), (0, pad_n)))
    b_mu_p = jnp.pad(b_mu, ((0, pad_n),))
    b_ls_p = jnp.pad(b_ls, ((0, pad_n),))

    # ---- Fuse the two heads into one weight / bias slab --------------------
    w_cat = jnp.concatenate([w_mu_p, w_ls_p], axis=1)          # [D_in, 2*D_out_p]
    b_cat = jnp.concatenate([b_mu_p, b_ls_p])[None, :]         # [1, 2*D_out_p]
    b_cat = b_cat.astype(jnp.float32)

    if mxu_dtype is not None:
        x_in = x.astype(mxu_dtype)
        w_cat = w_cat.astype(mxu_dtype)
    else:
        x_in = x
    itemsize = jnp.dtype(w_cat.dtype).itemsize

    # ---- Contraction (D_in) tiling: stream W if it won't sit in VMEM -------
    w_bytes = D_in * (2 * D_out_p) * itemsize
    if w_bytes <= weight_vmem_budget:
        tk = D_in                     # whole-K block; shape equals full dim
        D_in_p = D_in
    else:
        # K tile must be a multiple of 128 (it is the lane dim of the x block).
        tk = max(128, (weight_vmem_budget // ((2 * D_out_p) * itemsize)) // 128 * 128)
        D_in_p = _round_up(D_in, tk)
    if D_in_p != D_in:
        x_in = jnp.pad(x_in, ((0, D_in_p - D_in), (0, 0))[::-1])
        w_cat = jnp.pad(w_cat, ((0, D_in_p - D_in), (0, 0)))

    # ---- B tiling: multiple-of-8 row tile, pad B if needed -----------------
    tb = min(_round_up(max(B, 1), 8), tile_b)
    B_p = _round_up(B, tb)
    if B_p != B:
        x_in = jnp.pad(x_in, ((0, B_p - B), (0, 0)))

    grid = (B_p // tb, D_in_p // tk)

    out_shapes = (
        jax.ShapeDtypeStruct((B_p, D_out_p), jnp.float32),     # mu  (padded)
        jax.ShapeDtypeStruct((B_p, D_out_p), jnp.float32),     # scale (padded)
    )

    kernel = functools.partial(_normal_dist_kernel, d_out_p=D_out_p)

    mu_p, scale_p = pl.pallas_call(
        kernel,
        out_shape=out_shapes,
        grid_spec=pltpu.PrefetchScalarGridSpec(
            num_scalar_prefetch=0,
            grid=grid,
            in_specs=[
                # x tile marches down batch (parallel) and K (arbitrary) axes.
                pl.BlockSpec((tb, tk), lambda i, k: (i, k)),
                # fused weights: constant in i, streamed along K.
                pl.BlockSpec((tk, 2 * D_out_p), lambda i, k: (k, 0)),
                # bias: constant block -> VMEM-resident.
                pl.BlockSpec((1, 2 * D_out_p), lambda i, k: (0, 0)),
            ],
            out_specs=[
                pl.BlockSpec((tb, D_out_p), lambda i, k: (i, 0)),
                pl.BlockSpec((tb, D_out_p), lambda i, k: (i, 0)),
            ],
            scratch_shapes=[pltpu.VMEM((tb, 2 * D_out_p), jnp.float32)],
        ),
        compiler_params=pltpu.CompilerParams(
            dimension_semantics=("parallel", "arbitrary"),
        ),
    )(x_in, w_cat, b_cat)

    # Slice away batch + lane padding.
    return mu_p[:B, :D_out], scale_p[:B, :D_out]


def _reference(x, w_mu, b_mu, w_ls, b_ls):
    mu = x @ w_mu + b_mu
    logsigma = x @ w_ls + b_ls
    scale = jax.nn.softplus(logsigma + 0.5) + 1e-8
    return mu, scale


if __name__ == "__main__":
    B, D_in, D_out = 8, 32, 16

    key = jax.random.PRNGKey(0)
    kx, kwm, kbm, kwl, kbl = jax.random.split(key, 5)

    x = jax.random.normal(kx, (B, D_in), dtype=jnp.float32)

    # Deterministic init mimicking nn.Linear's uniform(-1/sqrt(fan_in), ...)
    bound = 1.0 / (D_in ** 0.5)
    w_mu = jax.random.uniform(kwm, (D_in, D_out), jnp.float32, -bound, bound)
    b_mu = jax.random.uniform(kbm, (D_out,), jnp.float32, -bound, bound)
    w_ls = jax.random.uniform(kwl, (D_in, D_out), jnp.float32, -bound, bound)
    b_ls = jax.random.uniform(kbl, (D_out,), jnp.float32, -bound, bound)

    mu, scale = normal_distribution_layer(x, w_mu, b_mu, w_ls, b_ls)
    jax.block_until_ready((mu, scale))

    mu_ref, scale_ref = _reference(x, w_mu, b_mu, w_ls, b_ls)
    assert mu.shape == (B, D_out) and scale.shape == (B, D_out)
    assert jnp.allclose(mu, mu_ref, atol=1e-5, rtol=1e-5)
    assert jnp.allclose(scale, scale_ref, atol=1e-5, rtol=1e-5)
    assert bool(jnp.all(scale > 0))

    # Also exercise the K-tiled (streamed-weight) path with a tiny budget.
    mu2, scale2 = normal_distribution_layer(
        x, w_mu, b_mu, w_ls, b_ls, weight_vmem_budget=1)
    jax.block_until_ready((mu2, scale2))
    assert jnp.allclose(mu2, mu_ref, atol=1e-5, rtol=1e-5)
    assert jnp.allclose(scale2, scale_ref, atol=1e-5, rtol=1e-5)

    print("KERNEL_OK")
</pallas_src>

<mosaic_0001>
module attributes {stable_mosaic.version = 11 : i64} {
  func.func @_normal_dist_kernel(%arg0: i32, %arg1: i32, %arg2: memref<8x32xf32, #tpu.memory_space<vmem>>, %arg3: memref<32x256xf32, #tpu.memory_space<vmem>>, %arg4: memref<1x256xf32, #tpu.memory_space<vmem>>, %arg5: memref<8x128xf32, #tpu.memory_space<vmem>>, %arg6: memref<8x128xf32, #tpu.memory_space<vmem>>, %arg7: memref<8x256xf32, #tpu.memory_space<vmem>>) attributes {dimension_semantics = [#tpu.dimension_semantics<parallel>, #tpu.dimension_semantics<arbitrary>], iteration_bounds = array<i64: 1, 1>, scalar_prefetch = 0 : i64, scratch_operands = 1 : i64, tpu.core_type = #tpu.core_type<tc>, window_params = [{transform_indices = @transform_0, window_bounds = array<i64: 8, 32>}, {transform_indices = @transform_1, window_bounds = array<i64: 32, 256>}, {pipeline_mode = #tpu.pipeline_mode<synchronous>, transform_indices = @transform_2, window_bounds = array<i64: 1, 256>}, {transform_indices = @transform_3, window_bounds = array<i64: 8, 128>}, {transform_indices = @transform_4, window_bounds = array<i64: 8, 128>}]} {
    %c0_i32 = arith.constant 0 : i32
    %0 = arith.cmpi eq, %arg1, %c0_i32 : i32
    %1 = arith.extui %0 : i1 to i32
    %c0_i32_0 = arith.constant 0 : i32
    %2 = arith.cmpi ne, %1, %c0_i32_0 : i32
    scf.if %2 {
      %cst_10 = arith.constant 0.000000e+00 : f32
      %12 = vector.broadcast %cst_10 : f32 to vector<8x256xf32>
      %c0_11 = arith.constant 0 : index
      %c0_12 = arith.constant 0 : index
      %13 = vector.load %arg7[%c0_11, %c0_12] : memref<8x256xf32, #tpu.memory_space<vmem>>, vector<8x256xf32>
      tpu.vector_store %arg7[%c0_11, %c0_12], %12 {strides = array<i32>} : memref<8x256xf32, #tpu.memory_space<vmem>>, vector<8x256xf32>,
    } else {
    }
    %c0 = arith.constant 0 : index
    %c0_1 = arith.constant 0 : index
    %3 = vector.load %arg7[%c0, %c0_1] : memref<8x256xf32, #tpu.memory_space<vmem>>, vector<8x256xf32>
    %c0_2 = arith.constant 0 : index
    %c0_3 = arith.constant 0 : index
    %4 = vector.load %arg2[%c0_2, %c0_3] : memref<8x32xf32, #tpu.memory_space<vmem>>, vector<8x32xf32>
    %c0_4 = arith.constant 0 : index
    %c0_5 = arith.constant 0 : index
    %5 = vector.load %arg3[%c0_4, %c0_5] : memref<32x256xf32, #tpu.memory_space<vmem>>, vector<32x256xf32>
    %cst = arith.constant dense<0.000000e+00> : vector<8x256xf32>
    %6 = tpu.matmul %4, %5, %cst {dimension_numbers = #tpu.dot_dimension_numbers<[1], [0], [0], [1], [0, 0, 1, 1], [], []>} : vector<8x32xf32>, vector<32x256xf32>, vector<8x256xf32> -> vector<8x256xf32>
    %7 = arith.addf %3, %6 : vector<8x256xf32>
    %c0_6 = arith.constant 0 : index
    %c0_7 = arith.constant 0 : index
    %8 = vector.load %arg7[%c0_6, %c0_7] : memref<8x256xf32, #tpu.memory_space<vmem>>, vector<8x256xf32>
    tpu.vector_store %arg7[%c0_6, %c0_7], %7 {strides = array<i32>} : memref<8x256xf32, #tpu.memory_space<vmem>>, vector<8x256xf32>,
    %c0_i32_8 = arith.constant 0 : i32
    %9 = arith.cmpi eq, %arg1, %c0_i32_8 : i32
    %10 = arith.extui %9 : i1 to i32
    %c0_i32_9 = arith.constant 0 : i32
    %11 = arith.cmpi ne, %10, %c0_i32_9 : i32
    scf.if %11 {
      %c0_10 = arith.constant 0 : index
      %c0_11 = arith.constant 0 : index
      %12 = vector.load %arg7[%c0_10, %c0_11] : memref<8x256xf32, #tpu.memory_space<vmem>>, vector<8x256xf32>
      %c0_12 = arith.constant 0 : index
      %c0_13 = arith.constant 0 : index
      %13 = vector.load %arg4[%c0_12, %c0_13] : memref<1x256xf32, #tpu.memory_space<vmem>>, vector<1x256xf32>
      %14 = vector.broadcast %13 : vector<1x256xf32> to vector<8x256xf32>
      %15 = arith.addf %12, %14 : vector<8x256xf32>
      %16 = vector.extract_strided_slice %15 {offsets = [0, 0], sizes = [8, 128], strides = [1, 1]} : vector<8x256xf32> to vector<8x128xf32>
      %c0_14 = arith.constant 0 : index
      %c0_15 = arith.constant 0 : index
      %17 = vector.load %arg5[%c0_14, %c0_15] : memref<8x128xf32, #tpu.memory_space<vmem>>, vector<8x128xf32>
      tpu.vector_store %arg5[%c0_14, %c0_15], %16 {strides = array<i32>} : memref<8x128xf32, #tpu.memory_space<vmem>>, vector<8x128xf32>,
      %18 = vector.extract_strided_slice %15 {offsets = [0, 128], sizes = [8, 128], strides = [1, 1]} : vector<8x256xf32> to vector<8x128xf32>
      %cst_16 = arith.constant 5.000000e-01 : f32
      %19 = vector.broadcast %cst_16 : f32 to vector<8x128xf32>
      %20 = arith.addf %18, %19 : vector<8x128xf32>
      %cst_17 = arith.constant 0.000000e+00 : f32
      %21 = vector.broadcast %cst_17 : f32 to vector<8x128xf32>
      %22 = arith.maximumf %20, %21 : vector<8x128xf32>
      %23 = math.absf %20 : vector<8x128xf32>
      %cst_18 = arith.constant 0.000000e+00 : f32
      %24 = vector.broadcast %cst_18 : f32 to vector<8x128xf32>
      %25 = arith.subf %24, %23 : vector<8x128xf32>
      %26 = math.exp %25 : vector<8x128xf32>
      %27 = math.log1p %26 : vector<8x128xf32>
      %28 = arith.addf %22, %27 : vector<8x128xf32>
      %cst_19 = arith.constant 9.99999993E-9 : f32
      %29 = vector.broadcast %cst_19 : f32 to vector<8x128xf32>
      %30 = arith.addf %28, %29 : vector<8x128xf32>
      %c0_20 = arith.constant 0 : index
      %c0_21 = arith.constant 0 : index
      %31 = vector.load %arg6[%c0_20, %c0_21] : memref<8x128xf32, #tpu.memory_space<vmem>>, vector<8x128xf32>
      tpu.vector_store %arg6[%c0_20, %c0_21], %30 {strides = array<i32>} : memref<8x128xf32, #tpu.memory_space<vmem>>, vector<8x128xf32>,
    } else {
    }
    return
  }
  func.func @transform_0(%arg0: i32, %arg1: i32) -> (i32, i32) {
    %c0_i32 = arith.constant 0 : i32
    return %arg0, %arg1 : i32, i32
  }
  func.func @transform_1(%arg0: i32, %arg1: i32) -> (i32, i32) {
    %c0_i32 = arith.constant 0 : i32
    %c0_i32_0 = arith.constant 0 : i32
    return %arg1, %c0_i32 : i32, i32
  }
  func.func @transform_2(%arg0: i32, %arg1: i32) -> (i32, i32) {
    %c0_i32 = arith.constant 0 : i32
    %c0_i32_0 = arith.constant 0 : i32
    %c0_i32_1 = arith.constant 0 : i32
    return %c0_i32, %c0_i32_0 : i32, i32
  }
  func.func @transform_3(%arg0: i32, %arg1: i32) -> (i32, i32) {
    %c0_i32 = arith.constant 0 : i32
    %c0_i32_0 = arith.constant 0 : i32
    return %arg0, %c0_i32 : i32, i32
  }
  func.func @transform_4(%arg0: i32, %arg1: i32) -> (i32, i32) {
    %c0_i32 = arith.constant 0 : i32
    %c0_i32_0 = arith.constant 0 : i32
    return %arg0, %c0_i32 : i32, i32
  }
}

</mosaic_0001>

<bundles_post_ra>
// kernel: tpu_custom_call.1
= control target key start
LH: loop header
LB: loop body
LE: loop exit
PB: predicated region body
PF: predicated region fallthrough
CT: control target
= control target key end

     0   :  { %10 = vsyncpa [#allocation4], 0  ;;  %s380_s0 = inlined_call_operand.hbm [shape: f32[8,32], index: 0, kind: input, shape index: {}]   ;;  %s381_s1 = inlined_call_operand.hbm [shape: f32[32,256], index: 1, kind: input, shape index: {}]   ;;  %s382_s2 = inlined_call_operand.hbm [shape: f32[1,256], index: 2, kind: input, shape index: {}]   ;;  %s383_s3 = inlined_call_operand.hbm [shape: f32[8,128], index: 3, kind: output, shape index: {0}]   ;;  %s384_s4 = inlined_call_operand.hbm [shape: f32[8,128], index: 4, kind: output, shape index: {1}]  }
   0x1   :  { %11 = vsyncpa [#allocation7], 0 }
   0x2   :  { %12 = vsyncpa [#allocation5], 0  ;;  %s29_s17 = sshll.u32 %s381_s1, 4  ;;  %s30_s17 = int_to_ptr.hbm [resolvable:$true] %s29_s17 }
   0x3   :  { %13 = vsyncpa [#allocation11], 0  ;;  %s333_s18 = smov [#allocation6]   ;;  %s19_s22 = sshll.u32 %s380_s0, 4  ;;  %s20_s22 = int_to_ptr.hbm [resolvable:$true] %s19_s22 }
   0x4   :  { %s31_s19 = sshll.u32 %s333_s18, 4  ;;  %s334_s23 = smov 256   ;;  %s32_s19 = int_to_ptr.vmem [resolvable:$true] %s31_s19 }
   0x5   :  { %s335_s24 = smov 16   ;;  %s336_s25 = smov [#allocation3]  }
   0x6   :  { %37 = dma.hbm_to_vmem [thread:$0]  %s30_s17, 1024, %s32_s19, [#allocation7], %s334_s23, %s334_s23, %s335_s24  }
   0x7   :  { %s21_s26 = sshll.u32 %s336_s25, 4  ;;  %s43_s29 = sshll.u32 %s382_s2, 4  ;;  %s22_s26 = int_to_ptr.vmem [resolvable:$true] %s21_s26  ;;  %s44_s29 = int_to_ptr.hbm [resolvable:$true] %s43_s29 }
   0x8   :  { %24 = dma.hbm_to_vmem [thread:$0]  %s20_s22, 128, %s22_s26, [#allocation4]  }
   0x9   :  { %s337_s1 = smov [#allocation8]  }
   0xa   :  { %s45_s30 = sshll.u32 %s337_s1, 4  ;;  %s46_s30 = int_to_ptr.vmem [resolvable:$true] %s45_s30 }
   0xb   :  { %48 = dma.hbm_to_vmem [thread:$0]  %s44_s29, 32, %s46_s30, [#allocation7]  }
   0xc   :  { %325 = dma.done.wait [#allocation4], 128  }
   0xd   :  { %326 = vsyncadd [#allocation4], 4294967168 }
   0xe   :  { %327 = dma.done.wait [#allocation7], 1056  }
   0xf   :  { %328 = vsyncadd [#allocation7], 4294966240  ;;  %v77_v0 = vld [vmem:[#allocation6 + $0x38] sm:$0xff]  ;;  %v75_v1 = vld [vmem:[#allocation6 + $0x28] sm:$0xff]  ;;  %vm78_vm0 = vcmask 261120   ;;  %s338_s0 = smov [#allocation9]  }
  0x10   :  { %114 = vmatpush.msra.mxu1 %v77_v0  ;;  %v76_v2 = vld [vmem:[#allocation6 + $0x30] sm:$0xff]  ;;  %v73_v3 = vld [vmem:[#allocation6 + $0x18] sm:$0xff]  ;;  %v74_v4 = vld [vmem:[#allocation6 + $0x20] sm:$0xff]  ;;  %s163_s2 = sshll.u32 %s338_s0, 4  ;;  %s165_s7 = sshll.u32 %s383_s3, 4  ;;  %s164_s2 = int_to_ptr.vmem [resolvable:$true] %s163_s2  ;;  %s166_s7 = int_to_ptr.hbm [resolvable:$true] %s165_s7 }
  0x11   :  { %94 = vmatpush.msra.mxu0 %v76_v2  ;;  %v72_v5 = vld [vmem:[#allocation6 + $0x10] sm:$0xff]  ;;  %v71_v6 = vld [vmem:[#allocation6 + $0x8] sm:$0xff]  ;;  %v69_v7 = vld [vmem:[#allocation3] sm:$0xff]  ;;  %s339_s3 = smov [#allocation10]   ;;  %s176_s11 = sshll.u32 %s384_s4, 4  ;;  %s177_s11 = int_to_ptr.hbm [resolvable:$true] %s176_s11 }
  0x12   :  { %115 = vmatpush.msra.mxu1 %v75_v1  ;;  %v70_v8 = vld [vmem:[#allocation6] sm:$0xff]  ;;  %s174_s8 = sshll.u32 %s339_s3, 4  ;;  %s175_s8 = int_to_ptr.vmem [resolvable:$true] %s174_s8 }
  0x13   :  { %95 = vmatpush.msra.mxu0 %v74_v4  ;;  %v131_v9 = vld [vmem:[#allocation8] sm:$0x3] }
  0x14   :  { %116 = vmatpush.msra.mxu1 %v73_v3  ;;  %v134_v10 = vperm.slane %v131_v9, 1  ;;  %v133_v11 = vperm.slane %v131_v9, 0 }
  0x15   :  { %96 = vmatpush.msra.mxu0 %v72_v5 }
  0x16   :  { %117 = vmatpush.msra.mxu1 %v71_v6 }
  0x17   :  { %193 = vmatmul.msk.f32.vlgmr.msra.gmra.mxu1 %vm78_vm0, %v69_v7  ;;  %97 = vmatpush.msra.mxu0 %v70_v8 }
  0x18   :  { %192 = vmatmul.msk.f32.vlgmr.msra.gmra.mxu0 %vm78_vm0, %v69_v7 }
  0x94   :  { %v119_v12 = vpop.f32.mrf.mxu1 }
  0x95   :  { %v138_v13 = vadd.f32 %v134_v10, %v119_v12  ;;  %v99_v14 = vpop.f32.mrf.mxu0 }
  0x96   :  { %v137_v15 = vadd.f32 %v133_v11, %v99_v14 }
  0x97   :  { %v140_v16 = vadd.f32 0.5, %v138_v13 }
  0x98   :  { %139 = vst [vmem:[#allocation9] sm:$0xff] %v137_v15 }
  0x99   :  { %v142_v17 = vand.u32 2147483647, %v140_v16  ;;  %168 = dma.vmem_to_hbm [thread:$0]  %s164_s2, 128, %s166_s7, [#allocation5]   ;;  %v141_v28 = vmax.f32 %v140_v16, 0.0 }
  0x9b   :  { %v143_v18 = vsub.f32 0.0, %v142_v17 }
  0x9d   :  { %v144_v19 = vmul.f32 1.442695, %v143_v18 }
  0x9f   :  { %201 = vpow2.f32 %v144_v19 }
  0xa5   :  { %v202_v20 = vpop.eup %201 }
  0xa6   :  { %v146_v21 = vadd.f32 1.0, %v202_v20  ;;  %v149_v22 = vmul.f32 -0.5, %v202_v20  ;;  %v152_v24 = vand.u32 2147483647, %v202_v20 }
  0xa8   :  { %203 = vlog2.f32 %v146_v21  ;;  %v150_v23 = vadd.f32 1.0, %v149_v22  ;;  %vm153_vm1 = vcmp.lt.f32.partialorder %v152_v24, 0.0004427343 }
  0xaa   :  { %v151_v27 = vmul.f32 %v202_v20, %v150_v23 }
  0xae   :  { %v204_v25 = vpop.eup %203 }
  0xaf   :  { %v148_v26 = vmul.f32 0.6931472, %v204_v25 }
  0xb1   :  { %v154_v29 = vsel %vm153_vm1, %v151_v27, %v148_v26 }
  0xb2   :  { %v155_v30 = vadd.f32 %v154_v29, %v141_v28 }
  0xb4   :  { %v156_v31 = vadd.f32 1e-08, %v155_v30 }
  0xb6   :  { %157 = vst [vmem:[#allocation10] sm:$0xff] %v156_v31 }
  0xb7   :  { %179 = dma.vmem_to_hbm [thread:$0]  %s175_s8, 128, %s177_s11, [#allocation11]  }
  0xb8   :  { %329 = dma.done.wait [#allocation5], 128  }
  0xb9   :  { %330 = vsyncadd [#allocation5], 4294967168 }
  0xba   :  { %331 = dma.done.wait [#allocation11], 128  }
  0xbb   :  { %332 = vsyncadd [#allocation11], 4294967168 }
  0xbc   :  { %188 = vsyncpa [#allocation4], 1 }
  0xbd   :  { %189 = vsyncpa [#allocation7], 1 }
  0xbe   :  { %190 = vsyncpa [#allocation5], 1 }
  0xbf   :  { %191 = vsyncpa [#allocation11], 1 }

</bundles_post_ra>
